<compile_context>
chip_gen: v7x
topology: tpu7x:2x2x1
jax: 0.10.0
libtpu: 0.0.40
codegen_flags: <defaults>
</compile_context>

<pallas_src>
import jax
import jax.numpy as jnp
from jax import lax
from jax.experimental import pallas as pl
from jax.experimental.pallas import tpu as pltpu


def _fill_im2col(xn, bott, s_ref, *, L, L_pad, Bn, ks_max, p_max):
    """Fill the (ks_max*Bn + C_in, L_pad) VMEM scratch for one sample:
       rows [k*Bn:(k+1)*Bn] : bott shifted by (k - p_max) with conv zero-padding,
       rows [ks_max*Bn:]    : MaxPool1d(3, stride=1, padding=1) of xn.
       xn is zero-padded beyond L, hence bott is zero there too; only the
       <= p_max wrap/boundary columns need explicit (tiny, masked) fixups."""
    # ---- shifted bottleneck taps (shared by all conv branches) ----
    for k in range(ks_max):
        sh = k - p_max                       # tap shift, static
        r0, r1 = k * Bn, (k + 1) * Bn
        if sh == 0:
            s_ref[r0:r1, :] = bott           # no roll, no mask needed
        else:
            s_ref[r0:r1, :] = pltpu.roll(bott, shift=(-sh) % L_pad, axis=1)
            if sh > 0:
                # columns that wrapped around the end of the (padded) row
                s_ref[r0:r1, L_pad - sh:] = jnp.zeros((Bn, sh), s_ref.dtype)
            else:
                w = -sh                      # columns whose source is < 0
                s_ref[r0:r1, :w] = jnp.zeros((Bn, w), s_ref.dtype)

    # ---- MaxPool1d(3, stride=1, padding=1) on x (conv_bottle input) ----
    left = pltpu.roll(xn, shift=1, axis=1)
    right = pltpu.roll(xn, shift=L_pad - 1, axis=1)
    pooled = jnp.maximum(jnp.maximum(left, xn), right)
    s_ref[ks_max * Bn:, :] = pooled
    # boundary columns: neighbours outside [0, L) must not participate
    s_ref[ks_max * Bn:, 0:1] = jnp.maximum(xn[:, 0:1], xn[:, 1:2])
    s_ref[ks_max * Bn:, L - 1:L] = jnp.maximum(xn[:, L - 2:L - 1], xn[:, L - 1:L])


def _make_stats_kernel(L, L_pad, Bn, C_out, ks_max, p_max, Nb):
    """Pass 1: bottleneck + fused branch matmul -> per-block BN sum / sumsq."""
    def kernel(x_ref, wb_ref, wf_ref, stat_ref, s_ref):
        if L < L_pad:   # hoisted once per grid step (not per sample)
            valid = lax.broadcasted_iota(jnp.int32, (C_out, L_pad), 1) < L
        ssum = jnp.zeros((C_out, 1), jnp.float32)
        ssq = jnp.zeros((C_out, 1), jnp.float32)
        for nb in range(Nb):                 # static unroll: Nb samples / step
            xn = x_ref[nb]                   # (C_in, L_pad)
            bott = jnp.dot(wb_ref[...], xn,
                           preferred_element_type=jnp.float32).astype(s_ref.dtype)
            _fill_im2col(xn, bott, s_ref, L=L, L_pad=L_pad, Bn=Bn,
                         ks_max=ks_max, p_max=p_max)
            # ONE fused matmul: every branch + conv_bottle -> all C_out channels
            y = jnp.dot(wf_ref[...], s_ref[...],
                        preferred_element_type=jnp.float32)      # (C_out, L_pad)
            yv = jnp.where(valid, y, 0.0) if L < L_pad else y
            ssum = ssum + jnp.sum(yv, axis=1, keepdims=True)
            ssq = ssq + jnp.sum(yv * yv, axis=1, keepdims=True)
        # single merged stats block (1, C_out, 2) -> one DMA per grid step
        stat_ref[0, :, 0:1] = ssum
        stat_ref[0, :, 1:2] = ssq
    return kernel


def _make_out_kernel(L, L_pad, Bn, C_out, ks_max, p_max, Nb):
    """Pass 2: recompute bottleneck + fused matmul, apply scale/shift + ReLU,
       store the final UNPADDED output once."""
    def kernel(x_ref, wb_ref, wf_ref, scale_ref, shift_ref, o_ref, s_ref):
        for nb in range(Nb):
            xn = x_ref[nb]
            bott = jnp.dot(wb_ref[...], xn,
                           preferred_element_type=jnp.float32).astype(s_ref.dtype)
            _fill_im2col(xn, bott, s_ref, L=L, L_pad=L_pad, Bn=Bn,
                         ks_max=ks_max, p_max=p_max)
            y = jnp.dot(wf_ref[...], s_ref[...],
                        preferred_element_type=jnp.float32)      # (C_out, L_pad)
            z = jnp.maximum(y * scale_ref[...] + shift_ref[...], 0.0)
            if L < L_pad:
                z = z[:, :L]                 # drop padded lanes inside the kernel
            o_ref[nb] = z.astype(o_ref.dtype)
    return kernel


def inception_block_1d(x, wb, wconvs, wcb, gamma, beta, kss, eps=1e-5,
                       compute_dtype=jnp.float32, batch_block=None):
    """x: (N, C_in, L). wb: (Bn, C_in). wconvs[i]: (ks_i, F, Bn) (PyTorch layout
    would be (F, Bn, ks)). wcb: (F, C_in). gamma/beta: (C_out, 1) with
    C_out = (len(kss)+1)*F.  Returns (N, C_out, L)."""
    N, C_in, L = x.shape
    assert L >= 2, "maxpool edge handling assumes L >= 2"
    Bn = wb.shape[0]
    F = wcb.shape[0]
    nk = len(kss)
    C_out = (nk + 1) * F
    ks_max = max(kss)
    p_max = (ks_max - 1) // 2

    # Lane-dense input layout: pad L to a multiple of 128.  Zero padding makes
    # the bottleneck output zero beyond L, which the edge-only im2col masking
    # relies on.
    L_pad = pl.cdiv(L, 128) * 128
    x_p = x if L_pad == L else jnp.pad(x, ((0, 0), (0, 0), (0, L_pad - L)))

    # Samples per grid step: amortize per-step overhead / enlarge DMA blocks
    # while keeping >= 2 grid steps (both v7x TensorCores busy).
    if batch_block is None:
        Nb = 1
        for cand in (4, 2):
            if N % cand == 0 and N // cand >= 2:
                Nb = cand
                break
    else:
        Nb = batch_block
    assert N % Nb == 0, "batch_block must divide N"
    G = N // Nb

    # ---- fused weight: (C_out, ks_max*Bn + C_in) ----
    #   rows [bi*F:(bi+1)*F] : branch bi taps placed at shift block j + (p_max - p_bi)
    #   rows [nk*F:]         : conv_bottle 1x1 weight acting on pooled x
    K_total = ks_max * Bn + C_in
    Wf = jnp.zeros((C_out, K_total), jnp.float32)
    for bi, (w, ks) in enumerate(zip(wconvs, kss)):
        off = p_max - (ks - 1) // 2
        for j in range(ks):
            k = j + off
            Wf = Wf.at[bi * F:(bi + 1) * F, k * Bn:(k + 1) * Bn].set(w[j])
    Wf = Wf.at[nk * F:, ks_max * Bn:].set(wcb)

    x_c = x_p.astype(compute_dtype)
    wb_c = wb.astype(compute_dtype)
    wf_c = Wf.astype(compute_dtype)

    cparams = pltpu.CompilerParams(
        dimension_semantics=("parallel",),
        vmem_limit_bytes=48 * 1024 * 1024)   # <= ~48 MiB keeps v7x (64 MiB) happy

    # ---------------- Pass 1: BN partial statistics only ----------------
    stats_kernel = _make_stats_kernel(L, L_pad, Bn, C_out, ks_max, p_max, Nb)
    stats = pl.pallas_call(
        stats_kernel,
        out_shape=jax.ShapeDtypeStruct((G, C_out, 2), jnp.float32),
        grid_spec=pltpu.PrefetchScalarGridSpec(
            num_scalar_prefetch=0,
            grid=(G,),
            in_specs=[
                pl.BlockSpec((Nb, C_in, L_pad), lambda g: (g, 0, 0)),  # x (pipelined)
                pl.BlockSpec((Bn, C_in), lambda g: (0, 0)),            # wb (resident)
                pl.BlockSpec((C_out, K_total), lambda g: (0, 0)),      # fused W (resident)
            ],
            out_specs=pl.BlockSpec((1, C_out, 2), lambda g: (g, 0, 0)),
            scratch_shapes=[pltpu.VMEM((K_total, L_pad), compute_dtype)],
        ),
        compiler_params=cparams,
    )(x_c, wb_c, wf_c)

    # ---- finish BN stats (tiny reduction) + fold gamma/beta once ----
    # NOTE: one-pass E[y^2]-E[y]^2 variance (standard fused-BN trick); fine at
    # these magnitudes, switch to a two-pass variance for wildly unnormalized x.
    cnt = jnp.float32(N * L)
    mean = jnp.sum(stats[:, :, 0], axis=0) / cnt                 # (C_out,)
    var = jnp.sum(stats[:, :, 1], axis=0) / cnt - mean * mean    # biased (BN train)
    inv = lax.rsqrt(var + eps)
    g = gamma.reshape(-1)
    b = beta.reshape(-1)
    scale = (g * inv).reshape(C_out, 1).astype(jnp.float32)
    shift = (b - mean * g * inv).reshape(C_out, 1).astype(jnp.float32)

    # ------- Pass 2: recompute conv, apply BN+ReLU, write final output -------
    out_kernel = _make_out_kernel(L, L_pad, Bn, C_out, ks_max, p_max, Nb)
    out = pl.pallas_call(
        out_kernel,
        out_shape=jax.ShapeDtypeStruct((N, C_out, L), x.dtype),
        grid_spec=pltpu.PrefetchScalarGridSpec(
            num_scalar_prefetch=0,
            grid=(G,),
            in_specs=[
                pl.BlockSpec((Nb, C_in, L_pad), lambda g: (g, 0, 0)),
                pl.BlockSpec((Bn, C_in), lambda g: (0, 0)),
                pl.BlockSpec((C_out, K_total), lambda g: (0, 0)),
                pl.BlockSpec((C_out, 1), lambda g: (0, 0)),            # scale (resident)
                pl.BlockSpec((C_out, 1), lambda g: (0, 0)),            # shift (resident)
            ],
            out_specs=pl.BlockSpec((Nb, C_out, L), lambda g: (g, 0, 0)),
            scratch_shapes=[pltpu.VMEM((K_total, L_pad), compute_dtype)],
        ),
        compiler_params=cparams,
    )(x_c, wb_c, wf_c, scale, shift)

    return out


def _reference(x, wb, wconvs, wcb, gamma, beta, kss, eps=1e-5):
    """Pure-JAX reference with identical semantics (for verification)."""
    N, C_in, L = x.shape
    bott = jnp.einsum('oc,ncl->nol', wb, x)
    branches = []
    for w, ks in zip(wconvs, kss):
        p = (ks - 1) // 2
        bpad = jnp.pad(bott, ((0, 0), (0, 0), (p, p)))
        acc = 0.0
        for k in range(ks):
            acc = acc + jnp.einsum('ob,nbl->nol', w[k], bpad[:, :, k:k + L])
        branches.append(acc)
    xpad = jnp.pad(x, ((0, 0), (0, 0), (1, 1)), constant_values=-jnp.inf)
    pooled = jnp.maximum(jnp.maximum(xpad[:, :, 0:L], xpad[:, :, 1:L + 1]),
                         xpad[:, :, 2:L + 2])
    branches.append(jnp.einsum('oc,ncl->nol', wcb, pooled))
    y = jnp.concatenate(branches, axis=1)
    mean = y.mean(axis=(0, 2), keepdims=True)
    var = ((y - mean) ** 2).mean(axis=(0, 2), keepdims=True)
    yn = (y - mean) / jnp.sqrt(var + eps)
    yn = yn * gamma.reshape(1, -1, 1) + beta.reshape(1, -1, 1)
    return jnp.maximum(yn, 0.0)


if __name__ == "__main__":
    # Small, forward-consistent shapes:
    #   x: (batch=4, in_channels=4, length=16)
    #   bottleneck_size=8, nb_filters=8, kss=(5, 3), stride=1
    # (batch=4 exercises the Nb=2 samples-per-grid-step path with grid=(2,).)
    N, C_in, L = 4, 4, 16
    Bn, F = 8, 8
    kss = (5, 3)
    C_out = (len(kss) + 1) * F

    key = jax.random.PRNGKey(0)
    k_x, k_wb, k_wcb, k_g, k_b, *k_ws = jax.random.split(key, 5 + len(kss))

    x = jax.random.normal(k_x, (N, C_in, L), dtype=jnp.float32)
    wb = 0.1 * jax.random.normal(k_wb, (Bn, C_in), dtype=jnp.float32)
    # conv weights stored as (ks, F, Bn)  (PyTorch layout would be (F, Bn, ks))
    wconvs = [0.1 * jax.random.normal(k, (ks, F, Bn), dtype=jnp.float32)
              for k, ks in zip(k_ws, kss)]
    wcb = 0.1 * jax.random.normal(k_wcb, (F, C_in), dtype=jnp.float32)
    # BatchNorm affine parameters (non-trivial to exercise scale/shift)
    gamma = 1.0 + 0.1 * jax.random.normal(k_g, (C_out, 1), dtype=jnp.float32)
    beta = 0.1 * jax.random.normal(k_b, (C_out, 1), dtype=jnp.float32)

    out = inception_block_1d(x, wb, wconvs, wcb, gamma, beta, kss,
                             compute_dtype=jnp.float32)  # bf16 recommended on v6e/v7x
    out = jax.block_until_ready(out)

    ref = _reference(x, wb, wconvs, wcb, gamma, beta, kss)
    assert out.shape == (N, C_out, L)
    assert jnp.allclose(out, ref, atol=2e-4, rtol=2e-4), "mismatch vs reference"

    print("KERNEL_OK")
</pallas_src>

<mosaic_0001>
module attributes {stable_mosaic.version = 11 : i64} {
  func.func @kernel(%arg0: i32, %arg1: memref<2x4x128xf32, #tpu.memory_space<vmem>>, %arg2: memref<8x4xf32, #tpu.memory_space<vmem>>, %arg3: memref<24x44xf32, #tpu.memory_space<vmem>>, %arg4: memref<1x24x2xf32, #tpu.memory_space<vmem>>, %arg5: memref<44x128xf32, #tpu.memory_space<vmem>>) attributes {dimension_semantics = [#tpu.dimension_semantics<parallel>], iteration_bounds = array<i64: 2>, scalar_prefetch = 0 : i64, scratch_operands = 1 : i64, tpu.core_type = #tpu.core_type<tc>, window_params = [{transform_indices = @transform_0, window_bounds = array<i64: 2, 4, 128>}, {pipeline_mode = #tpu.pipeline_mode<synchronous>, transform_indices = @transform_1, window_bounds = array<i64: 8, 4>}, {pipeline_mode = #tpu.pipeline_mode<synchronous>, transform_indices = @transform_2, window_bounds = array<i64: 24, 44>}, {transform_indices = @transform_3, window_bounds = array<i64: 1, 24, 2>}]} {
    %0 = tpu.iota {dimensions = array<i32: 1>} : vector<24x128xi32>
    %c16_i32 = arith.constant 16 : i32
    %1 = vector.broadcast %c16_i32 : i32 to vector<24x128xi32>
    %2 = arith.cmpi slt, %0, %1 : vector<24x128xi32>
    %cst = arith.constant 0.000000e+00 : f32
    %3 = vector.broadcast %cst : f32 to vector<24x1xf32>
    %cst_0 = arith.constant 0.000000e+00 : f32
    %4 = vector.broadcast %cst_0 : f32 to vector<24x1xf32>
    %c0 = arith.constant 0 : index
    %c0_1 = arith.constant 0 : index
    %c0_2 = arith.constant 0 : index
    %5 = vector.load %arg1[%c0, %c0_1, %c0_2] : memref<2x4x128xf32, #tpu.memory_space<vmem>>, vector<1x4x128xf32>
    %6 = vector.shape_cast %5 : vector<1x4x128xf32> to vector<4x128xf32>
    %c0_3 = arith.constant 0 : index
    %c0_4 = arith.constant 0 : index
    %7 = vector.load %arg2[%c0_3, %c0_4] : memref<8x4xf32, #tpu.memory_space<vmem>>, vector<8x4xf32>
    %cst_5 = arith.constant dense<0.000000e+00> : vector<8x128xf32>
    %8 = tpu.matmul %7, %6, %cst_5 {dimension_numbers = #tpu.dot_dimension_numbers<[1], [0], [0], [1], [0, 0, 1, 1], [], []>} : vector<8x4xf32>, vector<4x128xf32>, vector<8x128xf32> -> vector<8x128xf32>
    %c2_i32 = arith.constant 2 : i32
    %9 = tpu.dynamic_rotate %8 by %c2_i32 dim 1 : vector<8x128xf32>, i32 -> vector<8x128xf32>
    %c0_6 = arith.constant 0 : index
    %c0_7 = arith.constant 0 : index
    %10 = vector.load %arg5[%c0_6, %c0_7] : memref<44x128xf32, #tpu.memory_space<vmem>>, vector<8x128xf32>
    tpu.vector_store %arg5[%c0_6, %c0_7], %9 {strides = array<i32>} : memref<44x128xf32, #tpu.memory_space<vmem>>, vector<8x128xf32>,
    %cst_8 = arith.constant 0.000000e+00 : f32
    %11 = vector.broadcast %cst_8 : f32 to vector<8x2xf32>
    %c0_9 = arith.constant 0 : index
    %c0_10 = arith.constant 0 : index
    %12 = vector.load %arg5[%c0_9, %c0_10] : memref<44x128xf32, #tpu.memory_space<vmem>>, vector<8x2xf32>
    tpu.vector_store %arg5[%c0_9, %c0_10], %11 {strides = array<i32>} : memref<44x128xf32, #tpu.memory_space<vmem>>, vector<8x2xf32>,
    %c1_i32 = arith.constant 1 : i32
    %13 = tpu.dynamic_rotate %8 by %c1_i32 dim 1 : vector<8x128xf32>, i32 -> vector<8x128xf32>
    %c8 = arith.constant 8 : index
    %c0_11 = arith.constant 0 : index
    %14 = vector.load %arg5[%c8, %c0_11] : memref<44x128xf32, #tpu.memory_space<vmem>>, vector<8x128xf32>
    tpu.vector_store %arg5[%c8, %c0_11], %13 {strides = array<i32>} : memref<44x128xf32, #tpu.memory_space<vmem>>, vector<8x128xf32>,
    %cst_12 = arith.constant 0.000000e+00 : f32
    %15 = vector.broadcast %cst_12 : f32 to vector<8x1xf32>
    %c8_13 = arith.constant 8 : index
    %c0_14 = arith.constant 0 : index
    %16 = vector.load %arg5[%c8_13, %c0_14] : memref<44x128xf32, #tpu.memory_space<vmem>>, vector<8x1xf32>
    tpu.vector_store %arg5[%c8_13, %c0_14], %15 {strides = array<i32>} : memref<44x128xf32, #tpu.memory_space<vmem>>, vector<8x1xf32>,
    %c16 = arith.constant 16 : index
    %c0_15 = arith.constant 0 : index
    %17 = vector.load %arg5[%c16, %c0_15] : memref<44x128xf32, #tpu.memory_space<vmem>>, vector<8x128xf32>
    tpu.vector_store %arg5[%c16, %c0_15], %8 {strides = array<i32>} : memref<44x128xf32, #tpu.memory_space<vmem>>, vector<8x128xf32>,
    %c127_i32 = arith.constant 127 : i32
    %18 = tpu.dynamic_rotate %8 by %c127_i32 dim 1 : vector<8x128xf32>, i32 -> vector<8x128xf32>
    %c24 = arith.constant 24 : index
    %c0_16 = arith.constant 0 : index
    %19 = vector.load %arg5[%c24, %c0_16] : memref<44x128xf32, #tpu.memory_space<vmem>>, vector<8x128xf32>
    tpu.vector_store %arg5[%c24, %c0_16], %18 {strides = array<i32>} : memref<44x128xf32, #tpu.memory_space<vmem>>, vector<8x128xf32>,
    %cst_17 = arith.constant 0.000000e+00 : f32
    %20 = vector.broadcast %cst_17 : f32 to vector<8x1xf32>
    %c24_18 = arith.constant 24 : index
    %c127 = arith.constant 127 : index
    %21 = vector.load %arg5[%c24_18, %c127] : memref<44x128xf32, #tpu.memory_space<vmem>>, vector<8x1xf32>
    tpu.vector_store %arg5[%c24_18, %c127], %20 {strides = array<i32>} : memref<44x128xf32, #tpu.memory_space<vmem>>, vector<8x1xf32>,
    %c126_i32 = arith.constant 126 : i32
    %22 = tpu.dynamic_rotate %8 by %c126_i32 dim 1 : vector<8x128xf32>, i32 -> vector<8x128xf32>
    %c32 = arith.constant 32 : index
    %c0_19 = arith.constant 0 : index
    %23 = vector.load %arg5[%c32, %c0_19] : memref<44x128xf32, #tpu.memory_space<vmem>>, vector<8x128xf32>
    tpu.vector_store %arg5[%c32, %c0_19], %22 {strides = array<i32>} : memref<44x128xf32, #tpu.memory_space<vmem>>, vector<8x128xf32>,
    %cst_20 = arith.constant 0.000000e+00 : f32
    %24 = vector.broadcast %cst_20 : f32 to vector<8x2xf32>
    %c32_21 = arith.constant 32 : index
    %c126 = arith.constant 126 : index
    %25 = vector.load %arg5[%c32_21, %c126] : memref<44x128xf32, #tpu.memory_space<vmem>>, vector<8x2xf32>
    tpu.vector_store %arg5[%c32_21, %c126], %24 {strides = array<i32>} : memref<44x128xf32, #tpu.memory_space<vmem>>, vector<8x2xf32>,
    %c1_i32_22 = arith.constant 1 : i32
    %26 = tpu.dynamic_rotate %6 by %c1_i32_22 dim 1 : vector<4x128xf32>, i32 -> vector<4x128xf32>
    %c127_i32_23 = arith.constant 127 : i32
    %27 = tpu.dynamic_rotate %6 by %c127_i32_23 dim 1 : vector<4x128xf32>, i32 -> vector<4x128xf32>
    %28 = arith.maximumf %26, %6 : vector<4x128xf32>
    %29 = arith.maximumf %28, %27 : vector<4x128xf32>
    %c40 = arith.constant 40 : index
    %c0_24 = arith.constant 0 : index
    %30 = vector.load %arg5[%c40, %c0_24] : memref<44x128xf32, #tpu.memory_space<vmem>>, vector<4x128xf32>
    tpu.vector_store %arg5[%c40, %c0_24], %29 {strides = array<i32>} : memref<44x128xf32, #tpu.memory_space<vmem>>, vector<4x128xf32>,
    %31 = vector.extract_strided_slice %6 {offsets = [0, 0], sizes = [4, 1], strides = [1, 1]} : vector<4x128xf32> to vector<4x1xf32>
    %32 = vector.extract_strided_slice %6 {offsets = [0, 1], sizes = [4, 1], strides = [1, 1]} : vector<4x128xf32> to vector<4x1xf32>
    %33 = arith.maximumf %31, %32 : vector<4x1xf32>
    %c40_25 = arith.constant 40 : index
    %c0_26 = arith.constant 0 : index
    %34 = vector.load %arg5[%c40_25, %c0_26] : memref<44x128xf32, #tpu.memory_space<vmem>>, vector<4x1xf32>
    tpu.vector_store %arg5[%c40_25, %c0_26], %33 {strides = array<i32>} : memref<44x128xf32, #tpu.memory_space<vmem>>, vector<4x1xf32>,
    %35 = vector.extract_strided_slice %6 {offsets = [0, 14], sizes = [4, 1], strides = [1, 1]} : vector<4x128xf32> to vector<4x1xf32>
    %36 = vector.extract_strided_slice %6 {offsets = [0, 15], sizes = [4, 1], strides = [1, 1]} : vector<4x128xf32> to vector<4x1xf32>
    %37 = arith.maximumf %35, %36 : vector<4x1xf32>
    %c40_27 = arith.constant 40 : index
    %c15 = arith.constant 15 : index
    %38 = vector.load %arg5[%c40_27, %c15] : memref<44x128xf32, #tpu.memory_space<vmem>>, vector<4x1xf32>
    tpu.vector_store %arg5[%c40_27, %c15], %37 {strides = array<i32>} : memref<44x128xf32, #tpu.memory_space<vmem>>, vector<4x1xf32>,
    %c0_28 = arith.constant 0 : index
    %c0_29 = arith.constant 0 : index
    %39 = vector.load %arg3[%c0_28, %c0_29] : memref<24x44xf32, #tpu.memory_space<vmem>>, vector<24x44xf32>
    %c0_30 = arith.constant 0 : index
    %c0_31 = arith.constant 0 : index
    %40 = vector.load %arg5[%c0_30, %c0_31] : memref<44x128xf32, #tpu.memory_space<vmem>>, vector<44x128xf32>
    %cst_32 = arith.constant dense<0.000000e+00> : vector<24x128xf32>
    %41 = tpu.matmul %39, %40, %cst_32 {dimension_numbers = #tpu.dot_dimension_numbers<[1], [0], [0], [1], [0, 0, 1, 1], [], []>} : vector<24x44xf32>, vector<44x128xf32>, vector<24x128xf32> -> vector<24x128xf32>
    %cst_33 = arith.constant 0.000000e+00 : f32
    %42 = vector.broadcast %cst_33 : f32 to vector<24x128xf32>
    %43 = arith.select %2, %41, %42 : vector<24x128xi1>, vector<24x128xf32>
    %cst_34 = arith.constant dense<0.000000e+00> : vector<24xf32>
    %44 = vector.multi_reduction <add>, %43, %cst_34 [1] : vector<24x128xf32> to vector<24xf32>
    %45 = vector.shape_cast %44 : vector<24xf32> to vector<24x1xf32>
    %46 = arith.addf %3, %45 : vector<24x1xf32>
    %47 = arith.mulf %43, %43 : vector<24x128xf32>
    %cst_35 = arith.constant dense<0.000000e+00> : vector<24xf32>
    %48 = vector.multi_reduction <add>, %47, %cst_35 [1] : vector<24x128xf32> to vector<24xf32>
    %49 = vector.shape_cast %48 : vector<24xf32> to vector<24x1xf32>
    %50 = arith.addf %4, %49 : vector<24x1xf32>
    %c1 = arith.constant 1 : index
    %c0_36 = arith.constant 0 : index
    %c0_37 = arith.constant 0 : index
    %51 = vector.load %arg1[%c1, %c0_36, %c0_37] : memref<2x4x128xf32, #tpu.memory_space<vmem>>, vector<1x4x128xf32>
    %52 = vector.shape_cast %51 : vector<1x4x128xf32> to vector<4x128xf32>
    %c0_38 = arith.constant 0 : index
    %c0_39 = arith.constant 0 : index
    %53 = vector.load %arg2[%c0_38, %c0_39] : memref<8x4xf32, #tpu.memory_space<vmem>>, vector<8x4xf32>
    %cst_40 = arith.constant dense<0.000000e+00> : vector<8x128xf32>
    %54 = tpu.matmul %53, %52, %cst_40 {dimension_numbers = #tpu.dot_dimension_numbers<[1], [0], [0], [1], [0, 0, 1, 1], [], []>} : vector<8x4xf32>, vector<4x128xf32>, vector<8x128xf32> -> vector<8x128xf32>
    %c2_i32_41 = arith.constant 2 : i32
    %55 = tpu.dynamic_rotate %54 by %c2_i32_41 dim 1 : vector<8x128xf32>, i32 -> vector<8x128xf32>
    %c0_42 = arith.constant 0 : index
    %c0_43 = arith.constant 0 : index
    %56 = vector.load %arg5[%c0_42, %c0_43] : memref<44x128xf32, #tpu.memory_space<vmem>>, vector<8x128xf32>
    tpu.vector_store %arg5[%c0_42, %c0_43], %55 {strides = array<i32>} : memref<44x128xf32, #tpu.memory_space<vmem>>, vector<8x128xf32>,
    %cst_44 = arith.constant 0.000000e+00 : f32
    %57 = vector.broadcast %cst_44 : f32 to vector<8x2xf32>
    %c0_45 = arith.constant 0 : index
    %c0_46 = arith.constant 0 : index
    %58 = vector.load %arg5[%c0_45, %c0_46] : memref<44x128xf32, #tpu.memory_space<vmem>>, vector<8x2xf32>
    tpu.vector_store %arg5[%c0_45, %c0_46], %57 {strides = array<i32>} : memref<44x128xf32, #tpu.memory_space<vmem>>, vector<8x2xf32>,
    %c1_i32_47 = arith.constant 1 : i32
    %59 = tpu.dynamic_rotate %54 by %c1_i32_47 dim 1 : vector<8x128xf32>, i32 -> vector<8x128xf32>
    %c8_48 = arith.constant 8 : index
    %c0_49 = arith.constant 0 : index
    %60 = vector.load %arg5[%c8_48, %c0_49] : memref<44x128xf32, #tpu.memory_space<vmem>>, vector<8x128xf32>
    tpu.vector_store %arg5[%c8_48, %c0_49], %59 {strides = array<i32>} : memref<44x128xf32, #tpu.memory_space<vmem>>, vector<8x128xf32>,
    %cst_50 = arith.constant 0.000000e+00 : f32
    %61 = vector.broadcast %cst_50 : f32 to vector<8x1xf32>
    %c8_51 = arith.constant 8 : index
    %c0_52 = arith.constant 0 : index
    %62 = vector.load %arg5[%c8_51, %c0_52] : memref<44x128xf32, #tpu.memory_space<vmem>>, vector<8x1xf32>
    tpu.vector_store %arg5[%c8_51, %c0_52], %61 {strides = array<i32>} : memref<44x128xf32, #tpu.memory_space<vmem>>, vector<8x1xf32>,
    %c16_53 = arith.constant 16 : index
    %c0_54 = arith.constant 0 : index
    %63 = vector.load %arg5[%c16_53, %c0_54] : memref<44x128xf32, #tpu.memory_space<vmem>>, vector<8x128xf32>
    tpu.vector_store %arg5[%c16_53, %c0_54], %54 {strides = array<i32>} : memref<44x128xf32, #tpu.memory_space<vmem>>, vector<8x128xf32>,
    %c127_i32_55 = arith.constant 127 : i32
    %64 = tpu.dynamic_rotate %54 by %c127_i32_55 dim 1 : vector<8x128xf32>, i32 -> vector<8x128xf32>
    %c24_56 = arith.constant 24 : index
    %c0_57 = arith.constant 0 : index
    %65 = vector.load %arg5[%c24_56, %c0_57] : memref<44x128xf32, #tpu.memory_space<vmem>>, vector<8x128xf32>
    tpu.vector_store %arg5[%c24_56, %c0_57], %64 {strides = array<i32>} : memref<44x128xf32, #tpu.memory_space<vmem>>, vector<8x128xf32>,
    %cst_58 = arith.constant 0.000000e+00 : f32
    %66 = vector.broadcast %cst_58 : f32 to vector<8x1xf32>
    %c24_59 = arith.constant 24 : index
    %c127_60 = arith.constant 127 : index
    %67 = vector.load %arg5[%c24_59, %c127_60] : memref<44x128xf32, #tpu.memory_space<vmem>>, vector<8x1xf32>
    tpu.vector_store %arg5[%c24_59, %c127_60], %66 {strides = array<i32>} : memref<44x128xf32, #tpu.memory_space<vmem>>, vector<8x1xf32>,
    %c126_i32_61 = arith.constant 126 : i32
    %68 = tpu.dynamic_rotate %54 by %c126_i32_61 dim 1 : vector<8x128xf32>, i32 -> vector<8x128xf32>
    %c32_62 = arith.constant 32 : index
    %c0_63 = arith.constant 0 : index
    %69 = vector.load %arg5[%c32_62, %c0_63] : memref<44x128xf32, #tpu.memory_space<vmem>>, vector<8x128xf32>
    tpu.vector_store %arg5[%c32_62, %c0_63], %68 {strides = array<i32>} : memref<44x128xf32, #tpu.memory_space<vmem>>, vector<8x128xf32>,
    %cst_64 = arith.constant 0.000000e+00 : f32
    %70 = vector.broadcast %cst_64 : f32 to vector<8x2xf32>
    %c32_65 = arith.constant 32 : index
    %c126_66 = arith.constant 126 : index
    %71 = vector.load %arg5[%c32_65, %c126_66] : memref<44x128xf32, #tpu.memory_space<vmem>>, vector<8x2xf32>
    tpu.vector_store %arg5[%c32_65, %c126_66], %70 {strides = array<i32>} : memref<44x128xf32, #tpu.memory_space<vmem>>, vector<8x2xf32>,
    %c1_i32_67 = arith.constant 1 : i32
    %72 = tpu.dynamic_rotate %52 by %c1_i32_67 dim 1 : vector<4x128xf32>, i32 -> vector<4x128xf32>
    %c127_i32_68 = arith.constant 127 : i32
    %73 = tpu.dynamic_rotate %52 by %c127_i32_68 dim 1 : vector<4x128xf32>, i32 -> vector<4x128xf32>
    %74 = arith.maximumf %72, %52 : vector<4x128xf32>
    %75 = arith.maximumf %74, %73 : vector<4x128xf32>
    %c40_69 = arith.constant 40 : index
    %c0_70 = arith.constant 0 : index
    %76 = vector.load %arg5[%c40_69, %c0_70] : memref<44x128xf32, #tpu.memory_space<vmem>>, vector<4x128xf32>
    tpu.vector_store %arg5[%c40_69, %c0_70], %75 {strides = array<i32>} : memref<44x128xf32, #tpu.memory_space<vmem>>, vector<4x128xf32>,
    %77 = vector.extract_strided_slice %52 {offsets = [0, 0], sizes = [4, 1], strides = [1, 1]} : vector<4x128xf32> to vector<4x1xf32>
    %78 = vector.extract_strided_slice %52 {offsets = [0, 1], sizes = [4, 1], strides = [1, 1]} : vector<4x128xf32> to vector<4x1xf32>
    %79 = arith.maximumf %77, %78 : vector<4x1xf32>
    %c40_71 = arith.constant 40 : index
    %c0_72 = arith.constant 0 : index
    %80 = vector.load %arg5[%c40_71, %c0_72] : memref<44x128xf32, #tpu.memory_space<vmem>>, vector<4x1xf32>
    tpu.vector_store %arg5[%c40_71, %c0_72], %79 {strides = array<i32>} : memref<44x128xf32, #tpu.memory_space<vmem>>, vector<4x1xf32>,
    %81 = vector.extract_strided_slice %52 {offsets = [0, 14], sizes = [4, 1], strides = [1, 1]} : vector<4x128xf32> to vector<4x1xf32>
    %82 = vector.extract_strided_slice %52 {offsets = [0, 15], sizes = [4, 1], strides = [1, 1]} : vector<4x128xf32> to vector<4x1xf32>
    %83 = arith.maximumf %81, %82 : vector<4x1xf32>
    %c40_73 = arith.constant 40 : index
    %c15_74 = arith.constant 15 : index
    %84 = vector.load %arg5[%c40_73, %c15_74] : memref<44x128xf32, #tpu.memory_space<vmem>>, vector<4x1xf32>
    tpu.vector_store %arg5[%c40_73, %c15_74], %83 {strides = array<i32>} : memref<44x128xf32, #tpu.memory_space<vmem>>, vector<4x1xf32>,
    %c0_75 = arith.constant 0 : index
    %c0_76 = arith.constant 0 : index
    %85 = vector.load %arg3[%c0_75, %c0_76] : memref<24x44xf32, #tpu.memory_space<vmem>>, vector<24x44xf32>
    %c0_77 = arith.constant 0 : index
    %c0_78 = arith.constant 0 : index
    %86 = vector.load %arg5[%c0_77, %c0_78] : memref<44x128xf32, #tpu.memory_space<vmem>>, vector<44x128xf32>
    %cst_79 = arith.constant dense<0.000000e+00> : vector<24x128xf32>
    %87 = tpu.matmul %85, %86, %cst_79 {dimension_numbers = #tpu.dot_dimension_numbers<[1], [0], [0], [1], [0, 0, 1, 1], [], []>} : vector<24x44xf32>, vector<44x128xf32>, vector<24x128xf32> -> vector<24x128xf32>
    %cst_80 = arith.constant 0.000000e+00 : f32
    %88 = vector.broadcast %cst_80 : f32 to vector<24x128xf32>
    %89 = arith.select %2, %87, %88 : vector<24x128xi1>, vector<24x128xf32>
    %cst_81 = arith.constant dense<0.000000e+00> : vector<24xf32>
    %90 = vector.multi_reduction <add>, %89, %cst_81 [1] : vector<24x128xf32> to vector<24xf32>
    %91 = vector.shape_cast %90 : vector<24xf32> to vector<24x1xf32>
    %92 = arith.addf %46, %91 : vector<24x1xf32>
    %93 = arith.mulf %89, %89 : vector<24x128xf32>
    %cst_82 = arith.constant dense<0.000000e+00> : vector<24xf32>
    %94 = vector.multi_reduction <add>, %93, %cst_82 [1] : vector<24x128xf32> to vector<24xf32>
    %95 = vector.shape_cast %94 : vector<24xf32> to vector<24x1xf32>
    %96 = arith.addf %50, %95 : vector<24x1xf32>
    %c0_83 = arith.constant 0 : index
    %c0_84 = arith.constant 0 : index
    %c0_85 = arith.constant 0 : index
    %97 = vector.load %arg4[%c0_83, %c0_84, %c0_85] : memref<1x24x2xf32, #tpu.memory_space<vmem>>, vector<1x24x1xf32>
    %98 = vector.shape_cast %97 : vector<1x24x1xf32> to vector<24x1xf32>
    %99 = vector.shape_cast %92 : vector<24x1xf32> to vector<1x24x1xf32>
    tpu.vector_store %arg4[%c0_83, %c0_84, %c0_85], %99 {strides = array<i32>} : memref<1x24x2xf32, #tpu.memory_space<vmem>>, vector<1x24x1xf32>,
    %c0_86 = arith.constant 0 : index
    %c0_87 = arith.constant 0 : index
    %c1_88 = arith.constant 1 : index
    %100 = vector.load %arg4[%c0_86, %c0_87, %c1_88] : memref<1x24x2xf32, #tpu.memory_space<vmem>>, vector<1x24x1xf32>
    %101 = vector.shape_cast %100 : vector<1x24x1xf32> to vector<24x1xf32>
    %102 = vector.shape_cast %96 : vector<24x1xf32> to vector<1x24x1xf32>
    tpu.vector_store %arg4[%c0_86, %c0_87, %c1_88], %102 {strides = array<i32>} : memref<1x24x2xf32, #tpu.memory_space<vmem>>, vector<1x24x1xf32>,
    return
  }
  func.func @transform_0(%arg0: i32) -> (i32, i32, i32) {
    %c0_i32 = arith.constant 0 : i32
    %c0_i32_0 = arith.constant 0 : i32
    %c0_i32_1 = arith.constant 0 : i32
    return %arg0, %c0_i32, %c0_i32_0 : i32, i32, i32
  }
  func.func @transform_1(%arg0: i32) -> (i32, i32) {
    %c0_i32 = arith.constant 0 : i32
    %c0_i32_0 = arith.constant 0 : i32
    %c0_i32_1 = arith.constant 0 : i32
    return %c0_i32, %c0_i32_0 : i32, i32
  }
  func.func @transform_2(%arg0: i32) -> (i32, i32) {
    %c0_i32 = arith.constant 0 : i32
    %c0_i32_0 = arith.constant 0 : i32
    %c0_i32_1 = arith.constant 0 : i32
    return %c0_i32, %c0_i32_0 : i32, i32
  }
  func.func @transform_3(%arg0: i32) -> (i32, i32, i32) {
    %c0_i32 = arith.constant 0 : i32
    %c0_i32_0 = arith.constant 0 : i32
    %c0_i32_1 = arith.constant 0 : i32
    return %arg0, %c0_i32, %c0_i32_0 : i32, i32, i32
  }
}

</mosaic_0001>

<bundles_post_ra>
// kernel: tpu_custom_call.1
= control target key start
LH: loop header
LB: loop body
LE: loop exit
PB: predicated region body
PF: predicated region fallthrough
CT: control target
= control target key end

     0   :  { %8 = vsyncpa [#allocation4], 0  ;;  %s1336_s0 = inlined_call_operand.hbm [shape: f32[4,4,128], index: 0, kind: input, shape index: {}]   ;;  %s1337_s1 = inlined_call_operand.vmem [shape: f32[8,4], index: 1, kind: input, shape index: {}]   ;;  %s1338_s2 = inlined_call_operand.hbm [shape: f32[24,44], index: 2, kind: input, shape index: {}]   ;;  %s1339_s3 = inlined_call_operand.vmem [shape: f32[2,24,2], index: 3, kind: output, shape index: {}]  }
   0x1   :  { %10 = vsyncpa [#allocation4 + $0x1], 0 }
   0x2   :  { %11 = vsyncpa [#allocation6], 0  ;;  %s1094_s12 = smov 0   ;;  %s1096_s13 = smov 0  }
   0x3   :  { %s1098_s14 = smov 0   ;;  %s1100_s15 = smov 0  }
   0x4 LB: > { %s1113_s16 = sadd.s32 4294967295, %s1058_s15   ;;  %p37_p0 = scmp.ne.s32.totalorder %s1050_s13, %s1046_s12  ;;  %s1058_s15 = sphi %s1100_s15, %s1356_s15   ;;  %s1054_s14 = sphi %s1098_s14, %s1355_s14   ;;  %s1050_s13 = sphi %s1096_s13, %s1354_s13   ;;  %s1046_s12 = sphi %s1094_s12, %s1353_s12  }
   0x5   : > { %p1340_p1 = scmp.eq.s32.totalorder %s1113_s16, 0  ;;  %p779_p2 = scmp.ge.s32.totalorder %s1058_s15, 1 }
   0x6   : > { %p116_p3 = scmp.lt.s32.totalorder %s1058_s15, 3  ;;  %s1060_s19 = smov [#allocation5]  }
   0x7   : > { %p1121_p4 = por %p1340_p1, %p37_p0  ;;  %s131_s20 = sshll.u32 %s1060_s19, 4  ;;  %s132_s20 = int_to_ptr.vmem [resolvable:$true] %s131_s20 }
   0x8   : > { %p1125_p5 = pnand %p779_p2, %p116_p3  ;;  %s1138_s22 = sadd.s32 1, %s1058_s15  }
   0x9   : > { %s1343_s17 = scalar_select %p1121_p4, 1, 0 }
   0xa   : > { %s1344_s18 = scalar_select %p1125_p5, 1, 0 }
   0xb   : > { %p906_p6 = pneg %p1125_p5  ;;  %s24_s23 = sadd.s32 1, %s1054_s14 }
   0xc   : > { %s21_s24 = ssub.s32 %s1058_s15, %s1138_s22  ;;  %s962_s27 = scalar_lea.hbm %s1338_s2, 384 }
   0xd   : > { %p1133_p7 = pnand %p906_p6, %p1340_p1  ;;  %p963_p8 = scmp.ne.s32.totalorder %s1338_s2, %s962_s27 }
   0xe   : > { %p969_p12 = scmp.lt.u32.totalorder %s962_s27, %s1338_s2 }
   0xf   : > { %p964_p9 = pneg %p1133_p7 }
  0x11   : > { %p965_p10 = pnand %p964_p9, %p963_p8 }
  0x13   : > { %p966_p11 = pneg %p965_p10 }
  0x15   : > { %p971_p13 = pnand %p969_p12, %p966_p11 }
  0x17   : > { %974 = shalt.err (!%p971_p13)
}
  0x18   : > { %s975_s5 = scalar_lea.vmem %s132_s20, 384  ;;  %p983_p6 = scmp.lt.s32.totalorder %s132_s20, %s132_s20 }
  0x19   : > { %p976_p0 = scmp.ne.s32.totalorder %s132_s20, %s975_s5  ;;  %p984_p1 = scmp.lt.s32.totalorder %s975_s5, %s975_s5 }
  0x1b   : > { %p978_p2 = pnand %p976_p0, %p964_p9  ;;  %p985_p4 = por %p984_p1, %p983_p6 }
  0x1d   : > { %p979_p3 = pneg %p978_p2 }
  0x1f   : > { %p986_p5 = pnand %p985_p4, %p979_p3 }
  0x21   : > { %989 = shalt.err (!%p986_p5)
}
  0x22   : > { %s1061_s6 = smov 128   ;;  %s1062_s7 = smov 8  }
  0x23   : > { %909 = dma.hbm_to_vmem [thread:$0]  (!%p1133_p7), %s1338_s2, 384, %s132_s20, [#allocation6], %s1061_s6, %s1061_s6, %s1062_s7  }
  0x24   : > { %p22_p8 = scmp.eq.s32.totalorder %s21_s24, 0  ;;  %p31_p9 = scmp.ne.s32.totalorder %s1054_s14, %s1050_s13 }
  0x25   : > { %p32_p1 = scmp.eq.s32.totalorder %s1058_s15, 0  ;;  %p915_p4 = scmp.lt.s32.totalorder %s1058_s15, 2 }
  0x26   : > { %s1164_s10 = scalar_select %p22_p8, %s1054_s14, %s24_s23  }
  0x27   : > { %p33_p5 = por %p32_p1, %p31_p9  ;;  %s145_s11 = sand.u32 1, %s1054_s14  }
  0x28   : > { %s782_s12 = sshll.u32 %s145_s11, 3  ;;  %s804_s19 = sshll.u32 %s1058_s15, 7 }
  0x29   : > { %s1171_s27 = scalar_lea.hbm %s1336_s0, %s804_s19  ;;  %s149_s20 = scalar_lea.vmem [#allocation3], %s782_s12 }
  0x2a   : > { %s156_s21 = sshll.u32 %s149_s20, 4  ;;  %p1175_p7 = pnand %p915_p4, %p33_p5  ;;  %s1173_s21 = int_to_ptr.vmem [resolvable:$true] %s156_s21 }
  0x2b   : > { %s1179_s15 = scalar_lea.sflag [#allocation4], %s145_s11  ;;  %s990_s24 = scalar_lea.hbm %s1171_s27, 128 }
  0x2c   : > { %p991_p10 = scmp.ne.s32.totalorder %s1171_s27, %s990_s24  ;;  %p992_p11 = pneg %p1175_p7 }
  0x2d   : > { %s995_s30 = scalar_lea.hbm %s1336_s0, 256  ;;  %p996_p0 = scmp.lt.u32.totalorder %s1171_s27, %s1336_s0 }
  0x2e   : > { %p993_p12 = pnand %p992_p11, %p991_p10  ;;  %p997_p2 = scmp.lt.u32.totalorder %s995_s30, %s990_s24 }
  0x2f   : > { %p999_p6 = scmp.lt.u32.totalorder %s990_s24, %s1171_s27 }
  0x30   : > { %p994_p13 = pneg %p993_p12  ;;  %p998_p3 = por %p997_p2, %p996_p0 }
  0x32   : > { %p1000_p8 = por %p999_p6, %p998_p3 }
  0x34   : > { %p1001_p9 = pnand %p1000_p8, %p994_p13 }
  0x36   : > { %1004 = shalt.err (!%p1001_p9)
}
  0x37   : > { %s1005_s6 = scalar_lea.vmem %s1173_s21, 128  ;;  %s1063_s7 = smov [#allocation3]  }
  0x38   : > { %p1006_p1 = scmp.ne.s32.totalorder %s1173_s21, %s1005_s6  ;;  %s1010_s8 = sshll.u32 %s1063_s7, 4  ;;  %s1011_s8 = int_to_ptr.vmem [resolvable:$false] %s1010_s8 }
  0x39   : > { %s1012_s9 = scalar_lea.vmem %s1011_s8, 256  ;;  %p1013_p10 = scmp.lt.s32.totalorder %s1173_s21, %s1011_s8 }
  0x3a   : > { %p1008_p4 = pnand %p1006_p1, %p992_p11  ;;  %p1014_p12 = scmp.lt.s32.totalorder %s1012_s9, %s1005_s6 }
  0x3c   : > { %p1009_p5 = pneg %p1008_p4  ;;  %p1015_p0 = por %p1014_p12, %p1013_p10 }
  0x3e   : > { %p1016_p2 = pnand %p1015_p0, %p1009_p5 }
  0x40   : > { %1019 = shalt.err (!%p1016_p2)
}
  0x41   : > { %s1064_s11 = smov 64   ;;  %s1065_s12 = smov 4  }
  0x42   : > { %913 = dma.hbm_to_vmem [thread:$0]  (!%p1175_p7), %s1171_s27, 128, %s1173_s21, %s1179_s15, %s1064_s11, %s1064_s11, %s1065_s12  }
  0x43   : > { %p1347_p11 = scmp.ne.s32.totalorder %s1344_s18, 0 }
  0x44   : > { %s170_s19 = sand.u32 (!%p1347_p11), 1, %s1050_s13   ;;  %p1348_p13 = scmp.ne.s32.totalorder (!%p1347_p11), %s1343_s17, 0 }
  0x45   : > { %168 = sbr.rel (%p1347_p11) target bundleno = 822 (0x336), region = 32  ;;  %s786_s25 = sshll.u32 (!%p1347_p11), %s170_s19, 3 }
  0x46   : > { %s171_s26 = scalar_lea.sflag (!%p1347_p11), [#allocation4], %s170_s19  ;;  %s174_s20 = scalar_lea.vmem (!%p1347_p11), [#allocation3], %s786_s25 }
  0x4c   : > { %1037 = dma.done.wait (%p1348_p13), %s171_s26, 128  }
  0x4d   : > { %1039 = vsyncadd (%p1348_p13), %s171_s26, 4294967168  ;;  %p1349_p3 = scmp.eq.s32.totalorder %s1113_s16, 0 }
  0x4f   : > { %1041 = dma.done.wait (%p1349_p3), [#allocation6], 384   ;;  %p1350_p6 = pmov %p1349_p3 }
  0x50   : > { %v1066_v0 = vmov 0.0   ;;  %vm1067_vm0 = vmmov 0   ;;  %vm216_vm1 = vcmask 1043456   ;;  %vm212_vm2 = vcmask 31744   ;;  %v210_v1 = vld [vmem:[%s174_s20] sm:$0xf] }
  0x51   : > { %1043 = vsyncadd (%p1350_p6), [#allocation6], 4294966912  ;;  %827 = vmatprep.subr.mxu1 %v1066_v0  ;;  %829 = vmatprep.mubr.msk.f32.mxu1 %vm1067_vm0, %v1066_v0  ;;  %v211_v2 = vld [vmem:[%s1337_s1] sm:$0xff]  ;;  %v1227_v3 = vld [vmem:[%s174_s20 + $0x4] sm:$0xf]  ;;  %s1068_s27 = smov 127   ;;  %v207_v51 = vlaneseq }
  0x52   : > { %853 = vmatprep.subr.mxu0 %v1066_v0  ;;  %855 = vmatprep.mubr.msk.f32.mxu0 %vm1067_vm0, %v1066_v0  ;;  %s1069_s21 = smov 1   ;;  %vm322_vm3 = vcmask 3072   ;;  %s1070_s23 = smov 2   ;;  %v1071_v15 = vmov 0.0|0.0   ;;  %vm328_vm4 = vcmask 126072   ;;  %vm293_vm5 = vcmask 15360  }
  0x53   : > { %828 = vmatpush3.msk.msra.mxu1 %vm216_vm1, %v210_v1  ;;  %854 = vmatpush3.msk.msra.mxu0 %vm216_vm1, %v1227_v3  ;;  %s1072_s15 = smov 126   ;;  %vm298_vm6 = vcmask 7168   ;;  %vm304_vm7 = vcmask 1048568   ;;  %vm309_vm8 = vcmask 1048560   ;;  %vm1073_vm9 = vmmov 1   ;;  %v330_v39 = vld [vmem:[#allocation5] sm:$0xff] }
  0x54   : > { %830 = vmatmul.mubr.msk.f32.vlgmr.msra.gmra.mrb[0].mxu1 %vm212_vm2, %v211_v2  ;;  %856 = vmatmul.mubr.msk.f32.vlgmr.msra.gmra.mrb[0].mxu0 %vm212_vm2, %v211_v2  ;;  %vm1278_vm10 = vmpackc.low %vm216_vm1, %vm1073_vm9  ;;  %vm339_vm11 = vcmask 359424   ;;  %v331_v45 = vld [vmem:[#allocation5 + $0x8] sm:$0xff]  ;;  %v332_v47 = vld [vmem:[#allocation5 + $0x10] sm:$0xff]  ;;  %v208_v52 = vand.u32 127, %v207_v51  ;;  %p202_p7 = scmp.lt.s32.totalorder %s1113_s16, 1  ;;  %vm697_vm13 = vcmask 15368  }
  0x55   : > { %318 = vrot.lane.b32.xlu0 %v210_v1, %s1068_s27  ;;  %844 = vmatprep.mubr.msk.f32.mxu1 %vm1067_vm0, %v1066_v0 }
  0x56   : > { %870 = vmatprep.mubr.msk.f32.mxu0 %vm1067_vm0, %v1066_v0  ;;  %879 = vmatprep.subr.bf16.mxu1 %v1071_v15  ;;  %vm209_vm12 = vcmp.lt.s32.totalorder %v208_v52, 16  ;;  %s1358_s16 = smov (!%p202_p7, %s1113_s16), 1 }
  0x57   : > { %889 = vmatprep.subr.bf16.mxu0 %v1071_v15  ;;  %s899_s24 = smul.u32 24, %s1358_s16 }
  0x59   : > { %559 = vrot.lane.b32.xlu0 %v1227_v3, %s1068_s27  ;;  %s206_s30 = scalar_lea.vmem %s1339_s3, %s899_s24 }
  0x5d   : > { %311 = vrot.lane.b32.xlu0 %v210_v1, %s1069_s21 }
  0x61   : > { %313 = vrot.lane.b32.xlu0 %v210_v1, %s1068_s27 }
  0xc7   : > { %v319_v4 = vpop.permute.xlu0 %318 }
  0xc8   : > { %v321_v5 = vmax.f32 %v210_v1, %v319_v4 }
  0xca   : > { %325 = vrot.lane.b32.xlu0 %v321_v5, %s1069_s21 }
  0xcb   : > { %v560_v6 = vpop.permute.xlu0 %559 }
  0xcc   : > { %v562_v17 = vmax.f32 %v1227_v3, %v560_v6 }
  0xcf   : > { %v312_v7 = vpop.permute.xlu0 %311 }
  0xd0   : > { %v315_v8 = vmax.f32 %v312_v7, %v210_v1 }
  0xd3   : > { %v314_v9 = vpop.permute.xlu0 %313 }
  0xd4   : > { %v316_v10 = vmax.f32 %v315_v8, %v314_v9 }
  0xd6   : > { %317 = vst [vmem:[#allocation2 + $0x28] sm:$0xf] %v316_v10 }
  0xd7   : > { %323 = vst.msk [vmem:[#allocation2 + $0x28] sm:$0xf] %vm322_vm3, %v321_v5 }
 0x127   : > { %v286_v11 = vpop.f32.mrb[0].mxu1  ;;  %v1243_v12 = vpop.f32.mrb[0].mxu0 }
 0x128   : > { %290 = vrot.lane.b32.xlu1 %v286_v11, %s1070_s23  ;;  %v831_v13 = vpop.f32.mrb[1].mxu1  ;;  %539 = vrot.lane.b32.xlu0 %v1243_v12, %s1069_s21  ;;  %v857_v14 = vpop.f32.mrb[1].mxu0 }
 0x12c   : > { %295 = vrot.lane.b32.xlu1 %v286_v11, %s1069_s21  ;;  %544 = vrot.lane.b32.xlu0 %v1243_v12, %s1068_s27 }
 0x130   : > { %301 = vrot.lane.b32.xlu1 %v286_v11, %s1068_s27  ;;  %548 = vrot.lane.b32.xlu0 %v1243_v12, %s1072_s15 }
 0x134   : > { %306 = vrot.lane.b32.xlu1 %v286_v11, %s1072_s15 }
 0x138   : > { %535 = vrot.lane.b32.xlu1 %v1243_v12, %s1070_s23 }
 0x13c   : > { %552 = vrot.lane.b32.xlu1 %v1227_v3, %s1069_s21  ;;  %v326_v16 = vpop.permute.xlu0 %325 }
 0x13d   : > { %329 = vst.msk [vmem:[#allocation2 + $0x28] sm:$0xf] %vm328_vm4, %v326_v16 }
 0x140   : > { %554 = vrot.lane.b32.xlu1 %v1227_v3, %s1068_s27 }
 0x144   : > { %565 = vrot.lane.b32.xlu1 %v562_v17, %s1069_s21  ;;  %v338_v30 = vld [vmem:[#allocation2 + $0x28] sm:$0xf] }
 0x19a   : > { %v291_v18 = vpop.permute.xlu1 %290  ;;  %v540_v21 = vpop.permute.xlu0 %539 }
 0x19b   : > { %292 = vst [vmem:[#allocation2] sm:$0xff] %v291_v18 }
 0x19c   : > { %294 = vst.msk [vmem:[#allocation2] sm:$0xff] %vm293_vm5, %v1066_v0 }
 0x19e   : > { %v296_v19 = vpop.permute.xlu1 %295  ;;  %v545_v26 = vpop.permute.xlu0 %544 }
 0x19f   : > { %297 = vst [vmem:[#allocation2 + $0x8] sm:$0xff] %v296_v19 }
 0x1a0   : > { %299 = vst.msk [vmem:[#allocation2 + $0x8] sm:$0xff] %vm298_vm6, %v1066_v0 }
 0x1a2   : > { %v302_v20 = vpop.permute.xlu1 %301  ;;  %v549_v33 = vpop.permute.xlu0 %548 }
 0x1a3   : > { %303 = vst [vmem:[#allocation2 + $0x18] sm:$0xff] %v302_v20  ;;  %v333_v22 = vld [vmem:[#allocation2] sm:$0xff] }
 0x1a4   : > { %305 = vst.msk [vmem:[#allocation2 + $0x18] sm:$0xff] %vm304_vm7, %v1066_v0 }
 0x1a6   : > { %v307_v23 = vpop.permute.xlu1 %306 }
 0x1a7   : > { %v334_v24 = vld [vmem:[#allocation2 + $0x8] sm:$0xff]  ;;  %308 = vst [vmem:[#allocation2 + $0x20] sm:$0xff] %v307_v23 }
 0x1a8   : > { %541 = vst [vmem:[#allocation2 + $0x8] sm:$0xff] %v540_v21  ;;  %310 = vst.msk [vmem:[#allocation2 + $0x20] sm:$0xff] %vm309_vm8, %v1066_v0  ;;  %v880_v25 = vpack.c.bf16 %v334_v24, %v333_v22 }
 0x1a9   : > { %542 = vst.msk [vmem:[#allocation2 + $0x8] sm:$0xff] %vm298_vm6, %v1066_v0 }
 0x1aa   : > { %881 = vmatpush3.bf16.msra.mxu1 %v880_v25  ;;  %v536_v27 = vpop.permute.xlu1 %535 }
 0x1ab   : > { %v336_v28 = vld [vmem:[#allocation2 + $0x18] sm:$0xff]  ;;  %537 = vst [vmem:[#allocation2] sm:$0xff] %v536_v27  ;;  %882 = vmatprep.subr.bf16.mxu1 %v1071_v15 }
 0x1ac   : > { %546 = vst [vmem:[#allocation2 + $0x18] sm:$0xff] %v545_v26  ;;  %538 = vst.msk [vmem:[#allocation2] sm:$0xff] %vm293_vm5, %v1066_v0  ;;  %v883_v29 = vpack.c.bf16 %v336_v28, %v286_v11 }
 0x1ad   : > { %547 = vst.msk [vmem:[#allocation2 + $0x18] sm:$0xff] %vm304_vm7, %v1066_v0 }
 0x1ae   : > { %v553_v31 = vpop.permute.xlu1 %552  ;;  %884 = vmatpush3.bf16.msra.mxu1 %v883_v29 }
 0x1af   : > { %v337_v34 = vld [vmem:[#allocation2 + $0x20] sm:$0xff]  ;;  %885 = vmatprep.subr.bf16.mxu1 %v1071_v15  ;;  %v556_v36 = vmax.f32 %v553_v31, %v1227_v3 }
 0x1b0   : > { %v886_v35 = vpack.c.bf16 %v338_v30, %v337_v34  ;;  %550 = vst [vmem:[#allocation2 + $0x20] sm:$0xff] %v549_v33  ;;  %v573_v37 = vld [vmem:[#allocation2 + $0x8] sm:$0xff] }
 0x1b1   : > { %551 = vst.msk [vmem:[#allocation2 + $0x20] sm:$0xff] %vm309_vm8, %v1066_v0 }
 0x1b2   : > { %v555_v38 = vpop.permute.xlu1 %554  ;;  %888 = vmatpush3.bf16.msk.msra.mxu1 %vm1278_vm10, %v886_v35 }
 0x1b3   : > { %v557_v40 = vmax.f32 %v556_v36, %v555_v38  ;;  %v572_v41 = vld [vmem:[#allocation2] sm:$0xff] }
 0x1b4   : > { %v890_v42 = vpack.c.bf16 %v573_v37, %v572_v41  ;;  %v575_v43 = vld [vmem:[#allocation2 + $0x18] sm:$0xff] }
 0x1b5   : > { %558 = vst [vmem:[#allocation2 + $0x28] sm:$0xf] %v557_v40  ;;  %845 = vmatmul.mubr.msk.f32.vlgmr.msra.gmra.mrb[2].mxu1 %vm339_vm11, %v330_v39  ;;  %v893_v46 = vpack.c.bf16 %v575_v43, %v1243_v12 }
 0x1b6   : > { %563 = vst.msk [vmem:[#allocation2 + $0x28] sm:$0xf] %vm322_vm3, %v562_v17  ;;  %891 = vmatpush3.bf16.msra.mxu0 %v890_v42  ;;  %v566_v44 = vpop.permute.xlu1 %565  ;;  %847 = vmatprep.mubr.msk.f32.mxu1 %vm1067_vm0, %v1066_v0 }
 0x1b7   : > { %568 = vst.msk [vmem:[#allocation2 + $0x28] sm:$0xf] %vm328_vm4, %v566_v44  ;;  %892 = vmatprep.subr.bf16.mxu0 %v1071_v15 }
 0x1b8   : > { %v576_v48 = vld [vmem:[#allocation2 + $0x20] sm:$0xff] }
 0x1b9   : > { %848 = vmatmul.mubr.msk.f32.gmra.mrb[4].mxu1 %vm339_vm11, %v331_v45 }
 0x1ba   : > { %894 = vmatpush3.bf16.msra.mxu0 %v893_v46  ;;  %850 = vmatprep.mubr.msk.f32.mxu1 %vm1067_vm0, %v1066_v0 }
 0x1bb   : > { %895 = vmatprep.subr.bf16.mxu0 %v1071_v15 }
 0x1bd   : > { %851 = vmatmul.mubr.msk.f32.gmra.mrb[6].mxu1 %vm339_vm11, %v332_v47 }
 0x1be   : > { %v577_v49 = vld [vmem:[#allocation2 + $0x28] sm:$0xf] }
 0x1bf   : > { %v896_v50 = vpack.c.bf16 %v577_v49, %v576_v48 }
 0x1c1   : > { %898 = vmatpush3.bf16.msk.msra.mxu0 %vm1278_vm10, %v896_v50 }
 0x1c4   : > { %871 = vmatmul.mubr.msk.f32.vlgmr.msra.gmra.mrb[2].mxu0 %vm339_vm11, %v330_v39 }
 0x1c5   : > { %873 = vmatprep.mubr.msk.f32.mxu0 %vm1067_vm0, %v1066_v0 }
 0x1c8   : > { %874 = vmatmul.mubr.msk.f32.gmra.mrb[4].mxu0 %vm339_vm11, %v331_v45 }
 0x1c9   : > { %876 = vmatprep.mubr.msk.f32.mxu0 %vm1067_vm0, %v1066_v0 }
 0x1cc   : > { %877 = vmatmul.mubr.msk.f32.gmra.mrb[6].mxu0 %vm339_vm11, %v332_v47 }
 0x288   : > { %v418_v53 = vpop.f32.mrb[2].mxu1 }
 0x289   : > { %v846_v54 = vpop.f32.mrb[3].mxu1  ;;  %v432_v55 = vsel %vm209_vm12, %v418_v53, 0.0 }
 0x28a   : > { %435 = vadd.xlane.f32.xlu0 %v432_v55  ;;  %v444_v56 = vmul.f32 %v432_v55, %v432_v55 }
 0x28c   : > { %447 = vadd.xlane.f32.xlu1 %v444_v56  ;;  %v423_v57 = vpop.f32.mrb[4].mxu1 }
 0x28d   : > { %v849_v58 = vpop.f32.mrb[5].mxu1  ;;  %v433_v59 = vsel %vm209_vm12, %v423_v57, 0.0 }
 0x28e   : > { %v445_v60 = vmul.f32 %v433_v59, %v433_v59 }
 0x290   : > { %437 = vadd.xlane.f32.xlu1 %v433_v59  ;;  %449 = vadd.xlane.f32.xlu0 %v445_v60  ;;  %v428_v61 = vpop.f32.mrb[6].mxu1 }
 0x291   : > { %v852_v62 = vpop.f32.mrb[7].mxu1  ;;  %v434_v63 = vsel %vm209_vm12, %v428_v61, 0.0 }
 0x292   : > { %v446_v0 = vmul.f32 %v434_v63, %v434_v63 }
 0x294   : > { %439 = vadd.xlane.f32.xlu0 %v434_v63  ;;  %451 = vadd.xlane.f32.xlu1 %v446_v0 }
 0x297   : > { %v656_v1 = vpop.f32.mrb[2].mxu0 }
 0x298   : > { %v872_v2 = vpop.f32.mrb[3].mxu0  ;;  %v670_v3 = vsel %vm209_vm12, %v656_v1, 0.0 }
 0x299   : > { %673 = vadd.xlane.f32.xlu0 %v670_v3  ;;  %v682_v5 = vmul.f32 %v670_v3, %v670_v3 }
 0x29b   : > { %v661_v4 = vpop.f32.mrb[4].mxu0 }
 0x29c   : > { %v875_v6 = vpop.f32.mrb[5].mxu0  ;;  %v671_v7 = vsel %vm209_vm12, %v661_v4, 0.0 }
 0x29d   : > { %685 = vadd.xlane.f32.xlu0 %v682_v5  ;;  %675 = vadd.xlane.f32.xlu1 %v671_v7  ;;  %v683_v9 = vmul.f32 %v671_v7, %v671_v7 }
 0x29f   : > { %v666_v8 = vpop.f32.mrb[6].mxu0 }
 0x2a0   : > { %v878_v10 = vpop.f32.mrb[7].mxu0  ;;  %v672_v11 = vsel %vm209_vm12, %v666_v8, 0.0 }
 0x2a1   : > { %677 = vadd.xlane.f32.xlu0 %v672_v11  ;;  %687 = vadd.xlane.f32.xlu1 %v683_v9  ;;  %v684_v12 = vmul.f32 %v672_v11, %v672_v11 }
 0x2a5   : > { %689 = vadd.xlane.f32.xlu0 %v684_v12 }
 0x317   : > { %v436_v13 = vpop.xlane.xlu0 %435 }
 0x319   : > { %v448_v14 = vpop.xlane.xlu1 %447 }
 0x31d   : > { %v450_v15 = vpop.xlane.xlu0 %449  ;;  %v438_v17 = vpop.xlane.xlu1 %437 }
 0x321   : > { %v440_v16 = vpop.xlane.xlu0 %439  ;;  %v452_v18 = vpop.xlane.xlu1 %451 }
 0x326   : > { %v674_v19 = vpop.xlane.xlu0 %673 }
 0x327   : > { %v679_v20 = vadd.f32 %v674_v19, %v436_v13 }
 0x329   : > { %694 = vst.msk [vmem:[%s206_s30] sm:$0xff] %vm298_vm6, %v679_v20 }
 0x32a   : > { %v686_v21 = vpop.xlane.xlu0 %685  ;;  %v676_v22 = vpop.xlane.xlu1 %675 }
 0x32b   : > { %v691_v23 = vadd.f32 %v686_v21, %v448_v14  ;;  %v680_v24 = vadd.f32 %v676_v22, %v438_v17 }
 0x32d   : > { %698 = vst.msk [vmem:[%s206_s30] sm:$0xff] %vm697_vm13, %v691_v23 }
 0x32e   : > { %695 = vst.msk [vmem:[%s206_s30 + $0x8] sm:$0xff] %vm298_vm6, %v680_v24  ;;  %v678_v25 = vpop.xlane.xlu0 %677  ;;  %v688_v26 = vpop.xlane.xlu1 %687 }
 0x32f   : > { %v681_v27 = vadd.f32 %v678_v25, %v440_v16  ;;  %v692_v28 = vadd.f32 %v688_v26, %v450_v15 }
 0x331   : > { %696 = vst.msk [vmem:[%s206_s30 + $0x10] sm:$0xff] %vm298_vm6, %v681_v27 }
 0x332   : > { %699 = vst.msk [vmem:[%s206_s30 + $0x8] sm:$0xff] %vm697_vm13, %v692_v28  ;;  %v690_v29 = vpop.xlane.xlu0 %689 }
 0x333   : > { %v693_v30 = vadd.f32 %v690_v29, %v452_v18 }
 0x335   : > { %700 = vst.msk [vmem:[%s206_s30 + $0x10] sm:$0xff] %vm697_vm13, %v693_v30 }
 0x336 PF: > { %p14_p8 = scmp.ge.s32.totalorder %s1138_s22, 4   ;;  %s1353_s12 = smov %s1050_s13 }
 0x337   : > { %s1354_s13 = smov %s1054_s14  ;;  %s1355_s14 = smov %s1164_s10 }
 0x338   : > { %s1356_s15 = smov %s1138_s22  ;;  %16 = sbr.rel (!%p14_p8) target bundleno = 4 (0x4), region = 77 }
 0x33f   :  { %722 = vsyncpa [#allocation4], 1 }
 0x340   :  { %724 = vsyncpa [#allocation4 + $0x1], 1 }
 0x341   :  { %725 = vsyncpa [#allocation6], 1 }

</bundles_post_ra>
